<compile_context>
chip_gen: v7x
topology: tpu7x:2x2x1
jax: 0.10.0
libtpu: 0.0.40
codegen_flags: <defaults>
</compile_context>

<pallas_src>
import numpy as np
import jax
import jax.numpy as jnp
from jax.experimental import pallas as pl
from jax.experimental.pallas import tpu as pltpu


# ----------------------------------------------------------------------------
# Kernel: one grid step = one tile of TM patch-rows.
#   p_ref : (TM, Kp)   bf16   flattened patches
#   w_ref : (Kp, Ep)   bf16   flattened conv weight (grid-invariant)
#   b_ref : (1,  Ep)   f32    bias                  (grid-invariant)
#   o_ref : (TM, Ep)   out_dtype (f32 by default)
# ----------------------------------------------------------------------------
def _patch_embed_kernel(p_ref, w_ref, b_ref, o_ref):
    acc = jnp.dot(p_ref[...], w_ref[...], preferred_element_type=jnp.float32)
    o_ref[...] = (acc + b_ref[...]).astype(o_ref.dtype)   # (1, Ep) bias broadcasts


def _round_up(a, m):
    return (a + m - 1) // m * m


_VMEM_LIMIT_BYTES = 32 * 1024 * 1024   # explicit limit (raises v5e's 16 MiB default;
                                        # safe on v7x's 64 MiB physical VMEM)
_VMEM_BUDGET_BYTES = 28 * 1024 * 1024   # working-set budget with headroom under the limit


def _choose_tm(M, Kp, Ep, tm):
    """Row-tile size: multiple of 8, <= tm, >=2 grid steps, fits VMEM budget."""
    TM = min(tm, _round_up(M, 8))
    if M > 8:
        # At least 2 grid steps so the "parallel" axis can shard across v7x's 2 TCs.
        TM = min(TM, _round_up(pl.cdiv(M, 2), 8))
    # Double-buffered working set: patches(bf16) x2 + out(f32) x2 + weight(bf16) x2 + bias x2.
    # (If pl.Buffered(1) is honored the weight/bias use one buffer; budget conservatively.)
    while TM > 8:
        need = (2 * TM * Kp * 2) + (2 * TM * Ep * 4) + (2 * Kp * Ep * 2) + (2 * Ep * 4)
        if need <= _VMEM_BUDGET_BYTES:
            break
        TM = _round_up(TM // 2, 8)
    return max(TM, 8)


def patch_embed_forward(x, weight, bias, *, tubelet_size, patch_size,
                        tm=1024, out_dtype=jnp.float32):
    """x: (B, C, T, H, W); weight: (E, C, ts, pH, pW); bias: (E,).

    Returns (B, N, E) with N = (T//ts) * (H//pH) * (W//pW), matching
    PyTorch's `proj(x).flatten(2).transpose(1, 2)`.
    """
    B, C, T, H, W = x.shape
    E = weight.shape[0]
    ts = int(tubelet_size)
    ph, pw = patch_size
    Tp, Hp, Wp = T // ts, H // ph, W // pw
    N = Tp * Hp * Wp
    K = C * ts * ph * pw
    M = B * N

    # ---- im2col in the wrapper (layout only). Cast to bf16 *before* the
    # transpose so cast + transpose + (optional) pad fuse into one HBM pass
    # at half the bytes. ----
    xb = x.astype(jnp.bfloat16)
    patches = xb.reshape(B, C, Tp, ts, Hp, ph, Wp, pw)
    patches = patches.transpose(0, 2, 4, 6, 1, 3, 5, 7)     # (B,Tp,Hp,Wp, C,ts,ph,pw)
    patches = patches.reshape(M, K)

    w_flat = weight.astype(jnp.bfloat16).reshape(E, K).T    # (K, E), matches patch order

    # ---- pad only the lane-critical dims. K feeds the reduction so it must be
    # zero-padded; E only if not already a multiple of 128. No M padding: the
    # ragged last row tile is masked by Pallas and the final slice is a no-op. ----
    Kp = _round_up(K, 128)
    Ep = _round_up(E, 128)
    if Kp != K:
        patches = jnp.pad(patches, ((0, 0), (0, Kp - K)))
        w_flat = jnp.pad(w_flat, ((0, Kp - K), (0, 0)))
    if Ep != E:
        w_flat = jnp.pad(w_flat, ((0, 0), (0, Ep - E)))
    b_row = bias.astype(jnp.float32).reshape(1, E)
    if Ep != E:
        b_row = jnp.pad(b_row, ((0, 0), (0, Ep - E)))

    TM = _choose_tm(M, Kp, Ep, tm)
    grid_m = pl.cdiv(M, TM)

    # NOTE: if E ever grows so large (>= ~2048) that the resident (Kp, Ep) weight
    # alone outgrows the VMEM budget, add a second "parallel" grid axis over E.
    def build(const_mode):
        spec_kwargs = {} if const_mode is None else {"pipeline_mode": const_mode}
        return pl.pallas_call(
            _patch_embed_kernel,
            out_shape=jax.ShapeDtypeStruct((M, Ep), out_dtype),
            grid=(grid_m,),
            in_specs=[
                pl.BlockSpec((TM, Kp), lambda i: (i, 0)),                  # patch rows (tiled)
                pl.BlockSpec((Kp, Ep), lambda i: (0, 0), **spec_kwargs),   # weight (resident)
                pl.BlockSpec((1, Ep), lambda i: (0, 0), **spec_kwargs),    # bias (resident)
            ],
            out_specs=pl.BlockSpec((TM, Ep), lambda i: (i, 0)),
            compiler_params=pltpu.CompilerParams(
                dimension_semantics=("parallel",),
                vmem_limit_bytes=_VMEM_LIMIT_BYTES),
        )

    try:
        # Single-buffer the grid-invariant weight / bias (they are DMA'd only once).
        out = build(pl.Buffered(1))(patches, w_flat, b_row)
    except Exception:
        # pipeline_mode unsupported in this JAX version -> default double-buffering
        # (still correct; the constant index_map means no re-DMA either way).
        out = build(None)(patches, w_flat, b_row)

    if Ep != E:
        out = out[:, :E]
    return out.reshape(B, N, E)


# ----------------------------------------------------------------------------
# Pure-JAX reference mirroring the PyTorch PatchEmbed forward (real Conv3d).
# ----------------------------------------------------------------------------
def reference_forward(x, weight, bias, *, tubelet_size, patch_size):
    ts = int(tubelet_size)
    ph, pw = patch_size
    out = jax.lax.conv_general_dilated(
        x, weight,
        window_strides=(ts, ph, pw),
        padding="VALID",
        dimension_numbers=("NCDHW", "OIDHW", "NCDHW"))
    out = out + bias.reshape(1, -1, 1, 1, 1)
    B, E = out.shape[0], out.shape[1]
    return out.reshape(B, E, -1).transpose(0, 2, 1)          # (B, N, E)


if __name__ == "__main__":
    # Small shapes consistent with the module: video input (B, C, T, H, W).
    B, C = 2, 3
    T, H, W = 4, 16, 16
    tubelet_size = 2
    patch_size = (8, 8)
    embed_dim = 128            # lane-dense embed dim

    key = jax.random.PRNGKey(0)
    kx, kw, kb = jax.random.split(key, 3)
    x = jax.random.normal(kx, (B, C, T, H, W), dtype=jnp.float32)
    weight = (0.02 * jax.random.normal(
        kw, (embed_dim, C, tubelet_size, patch_size[0], patch_size[1]))).astype(jnp.float32)
    bias = (0.02 * jax.random.normal(kb, (embed_dim,))).astype(jnp.float32)

    out = patch_embed_forward(x, weight, bias,
                              tubelet_size=tubelet_size, patch_size=patch_size)
    out = jax.block_until_ready(out)

    ref = reference_forward(x, weight, bias,
                            tubelet_size=tubelet_size, patch_size=patch_size)
    # bf16 MXU operands (f32 accumulation) -> slightly looser tolerance than pure f32.
    np.testing.assert_allclose(np.asarray(out), np.asarray(ref), rtol=2e-2, atol=2e-2)

    print("KERNEL_OK")
</pallas_src>

<mosaic_0001>
module attributes {stable_mosaic.version = 11 : i64} {
  func.func @_patch_embed_kernel(%arg0: i32, %arg1: memref<8x384xbf16, #tpu.memory_space<vmem>>, %arg2: memref<384x128xbf16, #tpu.memory_space<vmem>>, %arg3: memref<1x128xf32, #tpu.memory_space<vmem>>, %arg4: memref<8x128xf32, #tpu.memory_space<vmem>>) attributes {dimension_semantics = [#tpu.dimension_semantics<parallel>], iteration_bounds = array<i64: 2>, scalar_prefetch = 0 : i64, scratch_operands = 0 : i64, tpu.core_type = #tpu.core_type<tc>, window_params = [{transform_indices = @transform_0, window_bounds = array<i64: 8, 384>}, {pipeline_mode = #tpu.pipeline_mode<synchronous>, transform_indices = @transform_1, window_bounds = array<i64: 384, 128>}, {pipeline_mode = #tpu.pipeline_mode<synchronous>, transform_indices = @transform_2, window_bounds = array<i64: 1, 128>}, {transform_indices = @transform_3, window_bounds = array<i64: 8, 128>}]} {
    %c0 = arith.constant 0 : index
    %c0_0 = arith.constant 0 : index
    %0 = vector.load %arg1[%c0, %c0_0] : memref<8x384xbf16, #tpu.memory_space<vmem>>, vector<8x384xbf16>
    %c0_1 = arith.constant 0 : index
    %c0_2 = arith.constant 0 : index
    %1 = vector.load %arg2[%c0_1, %c0_2] : memref<384x128xbf16, #tpu.memory_space<vmem>>, vector<384x128xbf16>
    %cst = arith.constant dense<0.000000e+00> : vector<8x128xf32>
    %2 = tpu.matmul %0, %1, %cst {dimension_numbers = #tpu.dot_dimension_numbers<[1], [0], [0], [1], [0, 0, 1, 1], [], []>} : vector<8x384xbf16>, vector<384x128xbf16>, vector<8x128xf32> -> vector<8x128xf32>
    %c0_3 = arith.constant 0 : index
    %c0_4 = arith.constant 0 : index
    %3 = vector.load %arg3[%c0_3, %c0_4] : memref<1x128xf32, #tpu.memory_space<vmem>>, vector<1x128xf32>
    %4 = vector.broadcast %3 : vector<1x128xf32> to vector<8x128xf32>
    %5 = arith.addf %2, %4 : vector<8x128xf32>
    %c0_5 = arith.constant 0 : index
    %c0_6 = arith.constant 0 : index
    %6 = vector.load %arg4[%c0_5, %c0_6] : memref<8x128xf32, #tpu.memory_space<vmem>>, vector<8x128xf32>
    tpu.vector_store %arg4[%c0_5, %c0_6], %5 {strides = array<i32>} : memref<8x128xf32, #tpu.memory_space<vmem>>, vector<8x128xf32>,
    return
  }
  func.func @transform_0(%arg0: i32) -> (i32, i32) {
    %c0_i32 = arith.constant 0 : i32
    %c0_i32_0 = arith.constant 0 : i32
    return %arg0, %c0_i32 : i32, i32
  }
  func.func @transform_1(%arg0: i32) -> (i32, i32) {
    %c0_i32 = arith.constant 0 : i32
    %c0_i32_0 = arith.constant 0 : i32
    %c0_i32_1 = arith.constant 0 : i32
    return %c0_i32, %c0_i32_0 : i32, i32
  }
  func.func @transform_2(%arg0: i32) -> (i32, i32) {
    %c0_i32 = arith.constant 0 : i32
    %c0_i32_0 = arith.constant 0 : i32
    %c0_i32_1 = arith.constant 0 : i32
    return %c0_i32, %c0_i32_0 : i32, i32
  }
  func.func @transform_3(%arg0: i32) -> (i32, i32) {
    %c0_i32 = arith.constant 0 : i32
    %c0_i32_0 = arith.constant 0 : i32
    return %arg0, %c0_i32 : i32, i32
  }
}

module attributes {stable_mosaic.version = 11 : i64} {
  func.func @_patch_embed_kernel(%arg0: i32, %arg1: memref<8x384xbf16, #tpu.memory_space<vmem>>, %arg2: memref<384x128xbf16, #tpu.memory_space<vmem>>, %arg3: memref<1x128xf32, #tpu.memory_space<vmem>>, %arg4: memref<8x128xf32, #tpu.memory_space<vmem>>) attributes {dimension_semantics = [#tpu.dimension_semantics<parallel>], iteration_bounds = array<i64: 2>, scalar_prefetch = 0 : i64, scratch_operands = 0 : i64, tpu.core_type = #tpu.core_type<tc>, window_params = [{transform_indices = @transform_0, window_bounds = array<i64: 8, 384>}, {pipeline_mode = #tpu.pipeline_mode<synchronous>, transform_indices = @transform_1, window_bounds = array<i64: 384, 128>}, {pipeline_mode = #tpu.pipeline_mode<synchronous>, transform_indices = @transform_2, window_bounds = array<i64: 1, 128>}, {transform_indices = @transform_3, window_bounds = array<i64: 8, 128>}]} {
    %c0 = arith.constant 0 : index
    %c0_0 = arith.constant 0 : index
    %0 = vector.load %arg1[%c0, %c0_0] : memref<8x384xbf16, #tpu.memory_space<vmem>>, vector<8x384xbf16>
    %c0_1 = arith.constant 0 : index
    %c0_2 = arith.constant 0 : index
    %1 = vector.load %arg2[%c0_1, %c0_2] : memref<384x128xbf16, #tpu.memory_space<vmem>>, vector<384x128xbf16>
    %cst = arith.constant dense<0.000000e+00> : vector<8x128xf32>
    %2 = tpu.matmul %0, %1, %cst {dimension_numbers = #tpu.dot_dimension_numbers<[1], [0], [0], [1], [0, 0, 1, 1], [], []>} : vector<8x384xbf16>, vector<384x128xbf16>, vector<8x128xf32> -> vector<8x128xf32>
    %c0_3 = arith.constant 0 : index
    %c0_4 = arith.constant 0 : index
    %3 = vector.load %arg3[%c0_3, %c0_4] : memref<1x128xf32, #tpu.memory_space<vmem>>, vector<1x128xf32>
    %4 = vector.broadcast %3 : vector<1x128xf32> to vector<8x128xf32>
    %5 = arith.addf %2, %4 : vector<8x128xf32>
    %c0_5 = arith.constant 0 : index
    %c0_6 = arith.constant 0 : index
    %6 = vector.load %arg4[%c0_5, %c0_6] : memref<8x128xf32, #tpu.memory_space<vmem>>, vector<8x128xf32>
    tpu.vector_store %arg4[%c0_5, %c0_6], %5 {strides = array<i32>} : memref<8x128xf32, #tpu.memory_space<vmem>>, vector<8x128xf32>,
    return
  }
  func.func @transform_0(%arg0: i32) -> (i32, i32) {
    %c0_i32 = arith.constant 0 : i32
    %c0_i32_0 = arith.constant 0 : i32
    return %arg0, %c0_i32 : i32, i32
  }
  func.func @transform_1(%arg0: i32) -> (i32, i32) {
    %c0_i32 = arith.constant 0 : i32
    %c0_i32_0 = arith.constant 0 : i32
    %c0_i32_1 = arith.constant 0 : i32
    return %c0_i32, %c0_i32_0 : i32, i32
  }
  func.func @transform_2(%arg0: i32) -> (i32, i32) {
    %c0_i32 = arith.constant 0 : i32
    %c0_i32_0 = arith.constant 0 : i32
    %c0_i32_1 = arith.constant 0 : i32
    return %c0_i32, %c0_i32_0 : i32, i32
  }
  func.func @transform_3(%arg0: i32) -> (i32, i32) {
    %c0_i32 = arith.constant 0 : i32
    %c0_i32_0 = arith.constant 0 : i32
    return %arg0, %c0_i32 : i32, i32
  }
}

</mosaic_0001>

<bundles_post_ra>
// kernel: tpu_custom_call.1
= control target key start
LH: loop header
LB: loop body
LE: loop exit
PB: predicated region body
PF: predicated region fallthrough
CT: control target
= control target key end

     0   :  { %8 = vsyncpa [#allocation3], 0  ;;  %s1133_s0 = inlined_call_operand.hbm [shape: bf16[16,384], index: 0, kind: input, shape index: {}]   ;;  %s1134_s1 = inlined_call_operand.hbm [shape: bf16[384,128], index: 1, kind: input, shape index: {}]   ;;  %s1135_s2 = inlined_call_operand.vmem [shape: f32[1,128], index: 2, kind: input, shape index: {}]   ;;  %s1136_s3 = inlined_call_operand.hbm [shape: f32[16,128], index: 3, kind: output, shape index: {}]  }
   0x1   :  { %10 = vsyncpa [#allocation3 + $0x1], 0 }
   0x2   :  { %11 = vsyncpa [#allocation6], 0 }
   0x3   :  { %12 = vsyncpa [#allocation4], 0 }
   0x4   :  { %14 = vsyncpa [#allocation4 + $0x1], 0  ;;  %s929_s12 = smov 0   ;;  %s931_s13 = smov 0  }
   0x5   :  { %s933_s14 = smov 0   ;;  %s935_s15 = smov 0  }
   0x6 LB: > { %s950_s16 = sadd.s32 4294967295, %s900_s15   ;;  %s590_s17 = sadd.s32 4294967294, %s900_s15   ;;  %s900_s15 = sphi %s935_s15, %s1156_s15   ;;  %s896_s14 = sphi %s933_s14, %s1155_s14   ;;  %s892_s13 = sphi %s931_s13, %s1154_s13   ;;  %s888_s12 = sphi %s929_s12, %s1153_s12  }
   0x7   : > { %p40_p0 = scmp.ne.s32.totalorder %s892_s13, %s888_s12  ;;  %p1137_p1 = scmp.eq.s32.totalorder %s950_s16, 0 }
   0x8   : > { %p112_p3 = scmp.eq.s32.totalorder %s590_s17, 1  ;;  %p591_p5 = scmp.ge.s32.totalorder %s900_s15, 1 }
   0x9   : > { %p959_p4 = por %p1137_p1, %p40_p0  ;;  %p119_p7 = scmp.lt.s32.totalorder %s900_s15, 3 }
   0xa   : > { %p964_p6 = por %p112_p3, %p40_p0  ;;  %s902_s21 = smov [#allocation5]  }
   0xb   : > { %s1140_s18 = scalar_select %p959_p4, 1, 0 }
   0xc   : > { %s1141_s19 = scalar_select %p964_p6, 1, 0 }
   0xd   : > { %p969_p8 = pnand %p591_p5, %p119_p7  ;;  %s131_s22 = sshll.u32 %s902_s21, 4  ;;  %s973_s22 = int_to_ptr.vmem [resolvable:$true] %s131_s22 }
   0xe   : > { %s985_s24 = sadd.s32 1, %s900_s15   ;;  %s27_s25 = sadd.s32 1, %s896_s14 }
   0xf   : > { %s1142_s20 = scalar_select %p969_p8, 1, 0 }
  0x10   : > { %p692_p9 = pneg %p969_p8  ;;  %s24_s26 = ssub.s32 %s900_s15, %s985_s24 }
  0x11   : > { %s772_s29 = scalar_lea.hbm %s1134_s1, 3072 }
  0x12   : > { %p980_p11 = pnand %p692_p9, %p1137_p1  ;;  %p773_p12 = scmp.ne.s32.totalorder %s1134_s1, %s772_s29 }
  0x13   : > { %p779_p5 = scmp.lt.u32.totalorder %s772_s29, %s1134_s1 }
  0x14   : > { %p774_p13 = pneg %p980_p11 }
  0x16   : > { %p775_p0 = pnand %p774_p13, %p773_p12 }
  0x18   : > { %p776_p3 = pneg %p775_p0 }
  0x1a   : > { %p781_p7 = pnand %p779_p5, %p776_p3 }
  0x1c   : > { %784 = shalt.err (!%p781_p7)
}
  0x1d   : > { %s785_s7 = scalar_lea.vmem %s973_s22, 3072  ;;  %p793_p2 = scmp.lt.s32.totalorder %s973_s22, %s973_s22 }
  0x1e   : > { %p786_p9 = scmp.ne.s32.totalorder %s973_s22, %s785_s7  ;;  %p794_p6 = scmp.lt.s32.totalorder %s785_s7, %s785_s7 }
  0x20   : > { %p788_p10 = pnand %p786_p9, %p774_p13  ;;  %p795_p4 = por %p794_p6, %p793_p2 }
  0x22   : > { %p789_p1 = pneg %p788_p10 }
  0x24   : > { %p796_p8 = pnand %p795_p4, %p789_p1 }
  0x26   : > { %799 = shalt.err (!%p796_p8)
}
  0x27   : > { %s903_s8 = smov 64   ;;  %s904_s9 = smov 4  }
  0x28   : > { %695 = dma.hbm_to_vmem [thread:$0]  (!%p980_p11), %s1134_s1, 3072, %s973_s22, [#allocation6], %s903_s8, %s903_s8, %s904_s9  }
  0x29   : > { %p25_p2 = scmp.eq.s32.totalorder %s24_s26, 0  ;;  %p34_p1 = scmp.ne.s32.totalorder %s896_s14, %s892_s13 }
  0x2a   : > { %p35_p4 = scmp.eq.s32.totalorder %s900_s15, 0  ;;  %p705_p6 = scmp.lt.s32.totalorder %s900_s15, 2 }
  0x2b   : > { %s1016_s17 = scalar_select %p25_p2, %s896_s14, %s27_s25  }
  0x2c   : > { %p36_p8 = por %p35_p4, %p34_p1  ;;  %p1144_p10 = scmp.eq.s32.totalorder %s950_s16, 1 }
  0x2d   : > { %s148_s27 = sand.u32 1, %s896_s14   ;;  %s682_s28 = smul.u32 192, %s900_s15 }
  0x2e   : > { %p1020_p12 = por %p1144_p10, %p34_p1  ;;  %s681_s29 = smul.u32 12, %s148_s27 }
  0x2f   : > { %p1026_p13 = pnand %p705_p6, %p36_p8  ;;  %s1033_s25 = scalar_lea.hbm %s1133_s0, %s682_s28 }
  0x30   : > { %s152_s30 = scalar_lea.vmem [#allocation2], %s681_s29  ;;  %s149_s5 = scalar_lea.sflag [#allocation3], %s148_s27 }
  0x31   : > { %s160_s4 = sshll.u32 %s152_s30, 4  ;;  %s800_s6 = scalar_lea.hbm %s1033_s25, 192  ;;  %s1035_s4 = int_to_ptr.vmem [resolvable:$true] %s160_s4 }
  0x32   : > { %p801_p11 = scmp.ne.s32.totalorder %s1033_s25, %s800_s6  ;;  %p802_p0 = pneg %p1026_p13 }
  0x33   : > { %s805_s9 = scalar_lea.hbm %s1133_s0, 384  ;;  %p806_p7 = scmp.lt.u32.totalorder %s1033_s25, %s1133_s0 }
  0x34   : > { %p803_p3 = pnand %p802_p0, %p801_p11  ;;  %p807_p9 = scmp.lt.u32.totalorder %s805_s9, %s800_s6 }
  0x35   : > { %p809_p1 = scmp.lt.u32.totalorder %s800_s6, %s1033_s25 }
  0x36   : > { %p804_p5 = pneg %p803_p3  ;;  %p808_p2 = por %p807_p9, %p806_p7 }
  0x38   : > { %p810_p4 = por %p809_p1, %p808_p2 }
  0x3a   : > { %p811_p6 = pnand %p810_p4, %p804_p5 }
  0x3c   : > { %814 = shalt.err (!%p811_p6)
}
  0x3d   : > { %s815_s27 = scalar_lea.vmem %s1035_s4, 192  ;;  %s905_s28 = smov [#allocation2]  }
  0x3e   : > { %p816_p8 = scmp.ne.s32.totalorder %s1035_s4, %s815_s27  ;;  %s820_s29 = sshll.u32 %s905_s28, 4  ;;  %s821_s29 = int_to_ptr.vmem [resolvable:$false] %s820_s29 }
  0x3f   : > { %s822_s22 = scalar_lea.vmem %s821_s29, 384  ;;  %p823_p3 = scmp.lt.s32.totalorder %s1035_s4, %s821_s29 }
  0x40   : > { %p818_p10 = pnand %p816_p8, %p802_p0  ;;  %p824_p7 = scmp.lt.s32.totalorder %s822_s22, %s815_s27 }
  0x42   : > { %p819_p11 = pneg %p818_p10  ;;  %p825_p9 = por %p824_p7, %p823_p3 }
  0x44   : > { %p826_p2 = pnand %p825_p9, %p819_p11 }
  0x46   : > { %829 = shalt.err (!%p826_p2)
}
  0x47   : > { %699 = dma.hbm_to_vmem [thread:$0]  (!%p1026_p13), %s1033_s25, 192, %s1035_s4, %s149_s5  }
  0x48   : > { %p1147_p5 = scmp.ne.s32.totalorder %s1142_s20, 0 }
  0x49   : > { %s1065_s26 = sand.u32 (!%p1147_p5), 1, %s892_s13   ;;  %p1148_p0 = scmp.ne.s32.totalorder (!%p1147_p5), %s1140_s18, 0 }
  0x4a   : > { %169 = sbr.rel (%p1147_p5) target bundleno = 352 (0x160), region = 32  ;;  %s172_s6 = scalar_lea.sflag (!%p1147_p5), [#allocation3], %s1065_s26 }
  0x4b   : > { %s683_s30 = smul.u32 (!%p1147_p5), 12, %s1065_s26 }
  0x4d   : > { %s1069_s7 = scalar_lea.vmem (!%p1147_p5), [#allocation2], %s683_s30 }
  0x51   : > { %875 = dma.done.wait (%p1148_p0), %s172_s6, 192  }
  0x52   : > { %877 = vsyncadd (%p1148_p0), %s172_s6, 4294967104  ;;  %p1149_p13 = scmp.eq.s32.totalorder %s950_s16, 0 }
  0x54   : > { %879 = dma.done.wait (%p1149_p13), [#allocation6], 3072   ;;  %p1150_p1 = pmov %p1149_p13 }
  0x55   : > { %v906_v0 = vmov 0.0   ;;  %vm907_vm0 = vmmov 0   ;;  %v745_v1 = vld [vmem:[#allocation5 + $0x40] sm:$0xff]   ;;  %v748_v4 = vld [vmem:[#allocation5 + $0x48] sm:$0xff]   ;;  %v751_v7 = vld [vmem:[#allocation5 + $0x50] sm:$0xff]   ;;  %s597_s18 = sshll.u32 %s1065_s26, 3 }
  0x56   : > { %881 = vsyncadd (%p1150_p1), [#allocation6], 4294964224  ;;  %661 = vmatprep.subr.bf16.mxu1 %v906_v0  ;;  %677 = vmatprep.mubr.msk.bf16.mxu1 %vm907_vm0, %v906_v0  ;;  %v746_v2 = vld [vmem:[#allocation5] sm:$0xff]   ;;  %v749_v5 = vld [vmem:[#allocation5 + $0x8] sm:$0xff]   ;;  %s627_s25 = sshll.u32 %s950_s16, 7  ;;  %s201_s4 = scalar_lea.vmem [#allocation7], %s597_s18 }
  0x57   : > { %630 = vmatprep.subr.bf16.mxu0 %v745_v1  ;;  %v747_v3 = vld [vmem:[#allocation5 + $0x80] sm:$0xff]   ;;  %v750_v6 = vld [vmem:[#allocation5 + $0x88] sm:$0xff]   ;;  %v752_v8 = vld [vmem:[#allocation5 + $0x10] sm:$0xff]   ;;  %s510_s5 = sshll.u32 %s201_s4, 4  ;;  %s1089_s10 = scalar_lea.hbm %s1136_s3, %s627_s25  ;;  %s1091_s5 = int_to_ptr.vmem [resolvable:$true] %s510_s5 }
  0x58   : > { %631 = vmatpush3.bf16.msra.mxu0 %v746_v2  ;;  %662 = vmatpush3.bf16.msra.mxu1 %v747_v3  ;;  %v753_v9 = vld [vmem:[#allocation5 + $0x90] sm:$0xff]   ;;  %v754_v10 = vld [vmem:[#allocation5 + $0x58] sm:$0xff]   ;;  %v757_v13 = vld [vmem:[#allocation5 + $0x60] sm:$0xff]   ;;  %s497_s11 = scalar_lea.sflag [#allocation4], %s1065_s26  ;;  %s830_s27 = scalar_lea.vmem %s1091_s5, 128 }
  0x59   : > { %632 = vmatprep.subr.bf16.mxu0 %v748_v4  ;;  %663 = vmatprep.subr.bf16.mxu1 %v906_v0  ;;  %v755_v11 = vld [vmem:[#allocation5 + $0x18] sm:$0xff]   ;;  %v758_v14 = vld [vmem:[#allocation5 + $0x20] sm:$0xff]   ;;  %v760_v16 = vld [vmem:[#allocation5 + $0x68] sm:$0xff]   ;;  %p831_p4 = scmp.ne.s32.totalorder %s1091_s5, %s830_s27  ;;  %s908_s16 = smov [#allocation7]  }
  0x5a   : > { %v756_v12 = vld [vmem:[#allocation5 + $0x98] sm:$0xff]   ;;  %v759_v15 = vld [vmem:[#allocation5 + $0xa0] sm:$0xff]   ;;  %v761_v17 = vld [vmem:[#allocation5 + $0x28] sm:$0xff]   ;;  %s834_s28 = sshll.u32 %s908_s16, 4  ;;  %s835_s28 = int_to_ptr.vmem [resolvable:$false] %s834_s28 }
  0x5b   : > { %v762_v18 = vld [vmem:[#allocation5 + $0xa8] sm:$0xff]   ;;  %v763_v19 = vld [vmem:[#allocation5 + $0x70] sm:$0xff]   ;;  %v766_v23 = vld [vmem:[#allocation5 + $0x78] sm:$0xff]   ;;  %p832_p6 = pnand %p831_p4, %p1020_p12  ;;  %s836_s29 = scalar_lea.vmem %s835_s28, 256 }
  0x5c   : > { %633 = vmatpush3.bf16.msra.mxu0 %v749_v5  ;;  %664 = vmatpush3.bf16.msra.mxu1 %v750_v6  ;;  %v764_v20 = vld [vmem:[#allocation5 + $0x30] sm:$0xff]   ;;  %v767_v25 = vld [vmem:[#allocation5 + $0x38] sm:$0xff]   ;;  %v598_v31 = vld [vmem:[%s1135_s2] ss:$0 sm:$0xff]  ;;  %p837_p10 = scmp.lt.s32.totalorder %s1091_s5, %s835_s28  ;;  %p838_p11 = scmp.lt.s32.totalorder %s836_s29, %s830_s27 }
  0x5d   : > { %634 = vmatprep.subr.bf16.mxu0 %v751_v7  ;;  %665 = vmatprep.subr.bf16.mxu1 %v906_v0  ;;  %v203_v21 = vld [vmem:[%s1069_s7] sm:$0xff]  ;;  %v771_v28 = vld [vmem:[%s1069_s7 + $0x8] ss:$0 sps:$4 sm:$0xff]   ;;  %p833_p8 = pneg %p832_p6 }
  0x5e   : > { %v765_v22 = vld [vmem:[#allocation5 + $0xb0] sm:$0xff]   ;;  %v600_v24 = vcombine.high %v203_v21, %v203_v21  ;;  %v770_v26 = vld [vmem:[#allocation5 + $0xb8] sm:$0xff]   ;;  %v599_v27 = vcombine.low %v203_v21, %v203_v21  ;;  %p839_p3 = por %p838_p11, %p837_p10 }
  0x60   : > { %635 = vmatpush3.bf16.msra.mxu0 %v752_v8  ;;  %666 = vmatpush3.bf16.msra.mxu1 %v753_v9  ;;  %p840_p7 = pnand %p839_p3, %p833_p8 }
  0x61   : > { %636 = vmatprep.subr.bf16.mxu0 %v754_v10  ;;  %667 = vmatprep.subr.bf16.mxu1 %v906_v0 }
  0x62   : > { %447 = vmatprep.mubr.bf16.mxu0 %v600_v24 }
  0x64   : > { %637 = vmatpush3.bf16.msra.mxu0 %v755_v11  ;;  %668 = vmatpush3.bf16.msra.mxu1 %v756_v12 }
  0x65   : > { %638 = vmatprep.subr.bf16.mxu0 %v757_v13  ;;  %669 = vmatprep.subr.bf16.mxu1 %v906_v0 }
  0x68   : > { %639 = vmatpush3.bf16.msra.mxu0 %v758_v14  ;;  %670 = vmatpush3.bf16.msra.mxu1 %v759_v15 }
  0x69   : > { %640 = vmatprep.subr.bf16.mxu0 %v760_v16  ;;  %671 = vmatprep.subr.bf16.mxu1 %v906_v0 }
  0x6c   : > { %641 = vmatpush3.bf16.msra.mxu0 %v761_v17  ;;  %672 = vmatpush3.bf16.msra.mxu1 %v762_v18 }
  0x6d   : > { %642 = vmatprep.subr.bf16.mxu0 %v763_v19  ;;  %673 = vmatprep.subr.bf16.mxu1 %v906_v0 }
  0x70   : > { %643 = vmatpush3.bf16.msra.mxu0 %v764_v20  ;;  %674 = vmatpush3.bf16.msra.mxu1 %v765_v22 }
  0x71   : > { %644 = vmatprep.subr.bf16.mxu0 %v766_v23  ;;  %675 = vmatprep.subr.bf16.mxu1 %v906_v0 }
  0x74   : > { %645 = vmatpush3.bf16.msra.mxu0 %v767_v25  ;;  %676 = vmatpush3.bf16.msra.mxu1 %v770_v26 }
  0x77   : > { %448 = vmatmul.mubr.bf16.vlgmr.msra.gmra.mrb[0].mxu0 %v599_v27  ;;  %678 = vmatmul.mubr.bf16.vlgmr.msra.gmra.mrb[0].mxu1 %v771_v28 }
 0x14a   : > { %v646_v29 = vpop.f32.mrb[0].mxu0  ;;  %v489_v32 = vpop.f32.mrb[0].mxu1 }
 0x14b   : > { %v647_v30 = vpop.f32.mrb[1].mxu0  ;;  %v679_v35 = vpop.f32.mrb[1].mxu1 }
 0x14c   : > { %v648_v33 = vadd.f32 %v647_v30, %v646_v29  ;;  %v649_v34 = vpop.f32.mrb[2].mxu0  ;;  %v492_v37 = vpop.f32.mrb[2].mxu1 }
 0x14d   : > { %v650_v36 = vpop.f32.mrb[3].mxu0  ;;  %v680_v39 = vpop.f32.mrb[3].mxu1 }
 0x14e   : > { %v450_v38 = vadd.f32 %v648_v33, %v598_v31 }
 0x150   : > { %v490_v40 = vadd.f32 %v489_v32, %v450_v38 }
 0x152   : > { %495 = vst [vmem:[%s201_s4] sm:$0xff] %v490_v40 }
 0x153   : > { %843 = shalt.err (!%p840_p7)
}
 0x154   : > { %s844_s22 = scalar_lea.hbm %s1089_s10, 128  ;;  %s848_s6 = scalar_lea.hbm %s1136_s3, 256 }
 0x155   : > { %p845_p9 = scmp.ne.s32.totalorder %s1089_s10, %s844_s22  ;;  %p849_p0 = scmp.lt.u32.totalorder %s1089_s10, %s1136_s3 }
 0x156   : > { %p850_p13 = scmp.lt.u32.totalorder %s848_s6, %s844_s22  ;;  %p852_p4 = scmp.lt.u32.totalorder %s844_s22, %s1089_s10 }
 0x157   : > { %p846_p2 = pnand %p845_p9, %p1020_p12 }
 0x158   : > { %p851_p1 = por %p850_p13, %p849_p0 }
 0x159   : > { %p847_p5 = pneg %p846_p2 }
 0x15a   : > { %p853_p6 = por %p852_p4, %p851_p1 }
 0x15c   : > { %p854_p8 = pnand %p853_p6, %p847_p5 }
 0x15e   : > { %857 = shalt.err (!%p854_p8)
}
 0x15f   : > { %690 = dma.vmem_to_hbm [thread:$0]  (%p1020_p12), %s1091_s5, 128, %s1089_s10, %s497_s11  }
 0x160 PF: > { %s522_s20 = sand.u32 1, %s888_s12   ;;  %p1151_p10 = scmp.ne.s32.totalorder %s1141_s19, 0 }
 0x161   : > { %p1152_p11 = scmp.ge.s32.totalorder %s900_s15, 2  ;;  %s523_s23 = scalar_lea.sflag [#allocation4], %s522_s20 }
 0x163   : > { %p701_p3 = pnand %p1152_p11, %p1151_p10 }
 0x165   : > { %883 = dma.done.wait (!%p701_p3), %s523_s23, 128  }
 0x166   : > { %885 = vsyncadd (!%p701_p3), %s523_s23, 4294967168  ;;  %p17_p7 = scmp.ge.s32.totalorder %s985_s24, 4   ;;  %s1153_s12 = smov %s892_s13 }
 0x167   : > { %s1154_s13 = smov %s896_s14  ;;  %s1155_s14 = smov %s1016_s17 }
 0x168   : > { %s1156_s15 = smov %s985_s24  ;;  %19 = sbr.rel (!%p17_p7) target bundleno = 6 (0x6), region = 81 }
 0x16f   :  { %528 = vsyncpa [#allocation3], 1 }
 0x170   :  { %530 = vsyncpa [#allocation3 + $0x1], 1 }
 0x171   :  { %531 = vsyncpa [#allocation6], 1 }
 0x172   :  { %532 = vsyncpa [#allocation4], 1 }
 0x173   :  { %534 = vsyncpa [#allocation4 + $0x1], 1 }

// kernel: tpu_custom_call.1
= control target key start
LH: loop header
LB: loop body
LE: loop exit
PB: predicated region body
PF: predicated region fallthrough
CT: control target
= control target key end

     0   :  { %8 = vsyncpa [#allocation3], 0  ;;  %s1133_s0 = inlined_call_operand.hbm [shape: bf16[16,384], index: 0, kind: input, shape index: {}]   ;;  %s1134_s1 = inlined_call_operand.hbm [shape: bf16[384,128], index: 1, kind: input, shape index: {}]   ;;  %s1135_s2 = inlined_call_operand.vmem [shape: f32[1,128], index: 2, kind: input, shape index: {}]   ;;  %s1136_s3 = inlined_call_operand.hbm [shape: f32[16,128], index: 3, kind: output, shape index: {}]  }
   0x1   :  { %10 = vsyncpa [#allocation3 + $0x1], 0 }
   0x2   :  { %11 = vsyncpa [#allocation6], 0 }
   0x3   :  { %12 = vsyncpa [#allocation4], 0 }
   0x4   :  { %14 = vsyncpa [#allocation4 + $0x1], 0  ;;  %s929_s12 = smov 0   ;;  %s931_s13 = smov 0  }
   0x5   :  { %s933_s14 = smov 0   ;;  %s935_s15 = smov 0  }
   0x6 LB: > { %s950_s16 = sadd.s32 4294967295, %s900_s15   ;;  %s590_s17 = sadd.s32 4294967294, %s900_s15   ;;  %s900_s15 = sphi %s935_s15, %s1156_s15   ;;  %s896_s14 = sphi %s933_s14, %s1155_s14   ;;  %s892_s13 = sphi %s931_s13, %s1154_s13   ;;  %s888_s12 = sphi %s929_s12, %s1153_s12  }
   0x7   : > { %p40_p0 = scmp.ne.s32.totalorder %s892_s13, %s888_s12  ;;  %p1137_p1 = scmp.eq.s32.totalorder %s950_s16, 0 }
   0x8   : > { %p112_p3 = scmp.eq.s32.totalorder %s590_s17, 1  ;;  %p591_p5 = scmp.ge.s32.totalorder %s900_s15, 1 }
   0x9   : > { %p959_p4 = por %p1137_p1, %p40_p0  ;;  %p119_p7 = scmp.lt.s32.totalorder %s900_s15, 3 }
   0xa   : > { %p964_p6 = por %p112_p3, %p40_p0  ;;  %s902_s21 = smov [#allocation5]  }
   0xb   : > { %s1140_s18 = scalar_select %p959_p4, 1, 0 }
   0xc   : > { %s1141_s19 = scalar_select %p964_p6, 1, 0 }
   0xd   : > { %p969_p8 = pnand %p591_p5, %p119_p7  ;;  %s131_s22 = sshll.u32 %s902_s21, 4  ;;  %s973_s22 = int_to_ptr.vmem [resolvable:$true] %s131_s22 }
   0xe   : > { %s985_s24 = sadd.s32 1, %s900_s15   ;;  %s27_s25 = sadd.s32 1, %s896_s14 }
   0xf   : > { %s1142_s20 = scalar_select %p969_p8, 1, 0 }
  0x10   : > { %p692_p9 = pneg %p969_p8  ;;  %s24_s26 = ssub.s32 %s900_s15, %s985_s24 }
  0x11   : > { %s772_s29 = scalar_lea.hbm %s1134_s1, 3072 }
  0x12   : > { %p980_p11 = pnand %p692_p9, %p1137_p1  ;;  %p773_p12 = scmp.ne.s32.totalorder %s1134_s1, %s772_s29 }
  0x13   : > { %p779_p5 = scmp.lt.u32.totalorder %s772_s29, %s1134_s1 }
  0x14   : > { %p774_p13 = pneg %p980_p11 }
  0x16   : > { %p775_p0 = pnand %p774_p13, %p773_p12 }
  0x18   : > { %p776_p3 = pneg %p775_p0 }
  0x1a   : > { %p781_p7 = pnand %p779_p5, %p776_p3 }
  0x1c   : > { %784 = shalt.err (!%p781_p7)
}
  0x1d   : > { %s785_s7 = scalar_lea.vmem %s973_s22, 3072  ;;  %p793_p2 = scmp.lt.s32.totalorder %s973_s22, %s973_s22 }
  0x1e   : > { %p786_p9 = scmp.ne.s32.totalorder %s973_s22, %s785_s7  ;;  %p794_p6 = scmp.lt.s32.totalorder %s785_s7, %s785_s7 }
  0x20   : > { %p788_p10 = pnand %p786_p9, %p774_p13  ;;  %p795_p4 = por %p794_p6, %p793_p2 }
  0x22   : > { %p789_p1 = pneg %p788_p10 }
  0x24   : > { %p796_p8 = pnand %p795_p4, %p789_p1 }
  0x26   : > { %799 = shalt.err (!%p796_p8)
}
  0x27   : > { %s903_s8 = smov 64   ;;  %s904_s9 = smov 4  }
  0x28   : > { %695 = dma.hbm_to_vmem [thread:$0]  (!%p980_p11), %s1134_s1, 3072, %s973_s22, [#allocation6], %s903_s8, %s903_s8, %s904_s9  }
  0x29   : > { %p25_p2 = scmp.eq.s32.totalorder %s24_s26, 0  ;;  %p34_p1 = scmp.ne.s32.totalorder %s896_s14, %s892_s13 }
  0x2a   : > { %p35_p4 = scmp.eq.s32.totalorder %s900_s15, 0  ;;  %p705_p6 = scmp.lt.s32.totalorder %s900_s15, 2 }
  0x2b   : > { %s1016_s17 = scalar_select %p25_p2, %s896_s14, %s27_s25  }
  0x2c   : > { %p36_p8 = por %p35_p4, %p34_p1  ;;  %p1144_p10 = scmp.eq.s32.totalorder %s950_s16, 1 }
  0x2d   : > { %s148_s27 = sand.u32 1, %s896_s14   ;;  %s682_s28 = smul.u32 192, %s900_s15 }
  0x2e   : > { %p1020_p12 = por %p1144_p10, %p34_p1  ;;  %s681_s29 = smul.u32 12, %s148_s27 }
  0x2f   : > { %p1026_p13 = pnand %p705_p6, %p36_p8  ;;  %s1033_s25 = scalar_lea.hbm %s1133_s0, %s682_s28 }
  0x30   : > { %s152_s30 = scalar_lea.vmem [#allocation2], %s681_s29  ;;  %s149_s5 = scalar_lea.sflag [#allocation3], %s148_s27 }
  0x31   : > { %s160_s4 = sshll.u32 %s152_s30, 4  ;;  %s800_s6 = scalar_lea.hbm %s1033_s25, 192  ;;  %s1035_s4 = int_to_ptr.vmem [resolvable:$true] %s160_s4 }
  0x32   : > { %p801_p11 = scmp.ne.s32.totalorder %s1033_s25, %s800_s6  ;;  %p802_p0 = pneg %p1026_p13 }
  0x33   : > { %s805_s9 = scalar_lea.hbm %s1133_s0, 384  ;;  %p806_p7 = scmp.lt.u32.totalorder %s1033_s25, %s1133_s0 }
  0x34   : > { %p803_p3 = pnand %p802_p0, %p801_p11  ;;  %p807_p9 = scmp.lt.u32.totalorder %s805_s9, %s800_s6 }
  0x35   : > { %p809_p1 = scmp.lt.u32.totalorder %s800_s6, %s1033_s25 }
  0x36   : > { %p804_p5 = pneg %p803_p3  ;;  %p808_p2 = por %p807_p9, %p806_p7 }
  0x38   : > { %p810_p4 = por %p809_p1, %p808_p2 }
  0x3a   : > { %p811_p6 = pnand %p810_p4, %p804_p5 }
  0x3c   : > { %814 = shalt.err (!%p811_p6)
}
  0x3d   : > { %s815_s27 = scalar_lea.vmem %s1035_s4, 192  ;;  %s905_s28 = smov [#allocation2]  }
  0x3e   : > { %p816_p8 = scmp.ne.s32.totalorder %s1035_s4, %s815_s27  ;;  %s820_s29 = sshll.u32 %s905_s28, 4  ;;  %s821_s29 = int_to_ptr.vmem [resolvable:$false] %s820_s29 }
  0x3f   : > { %s822_s22 = scalar_lea.vmem %s821_s29, 384  ;;  %p823_p3 = scmp.lt.s32.totalorder %s1035_s4, %s821_s29 }
  0x40   : > { %p818_p10 = pnand %p816_p8, %p802_p0  ;;  %p824_p7 = scmp.lt.s32.totalorder %s822_s22, %s815_s27 }
  0x42   : > { %p819_p11 = pneg %p818_p10  ;;  %p825_p9 = por %p824_p7, %p823_p3 }
  0x44   : > { %p826_p2 = pnand %p825_p9, %p819_p11 }
  0x46   : > { %829 = shalt.err (!%p826_p2)
}
  0x47   : > { %699 = dma.hbm_to_vmem [thread:$0]  (!%p1026_p13), %s1033_s25, 192, %s1035_s4, %s149_s5  }
  0x48   : > { %p1147_p5 = scmp.ne.s32.totalorder %s1142_s20, 0 }
  0x49   : > { %s1065_s26 = sand.u32 (!%p1147_p5), 1, %s892_s13   ;;  %p1148_p0 = scmp.ne.s32.totalorder (!%p1147_p5), %s1140_s18, 0 }
  0x4a   : > { %169 = sbr.rel (%p1147_p5) target bundleno = 352 (0x160), region = 32  ;;  %s172_s6 = scalar_lea.sflag (!%p1147_p5), [#allocation3], %s1065_s26 }
  0x4b   : > { %s683_s30 = smul.u32 (!%p1147_p5), 12, %s1065_s26 }
  0x4d   : > { %s1069_s7 = scalar_lea.vmem (!%p1147_p5), [#allocation2], %s683_s30 }
  0x51   : > { %875 = dma.done.wait (%p1148_p0), %s172_s6, 192  }
  0x52   : > { %877 = vsyncadd (%p1148_p0), %s172_s6, 4294967104  ;;  %p1149_p13 = scmp.eq.s32.totalorder %s950_s16, 0 }
  0x54   : > { %879 = dma.done.wait (%p1149_p13), [#allocation6], 3072   ;;  %p1150_p1 = pmov %p1149_p13 }
  0x55   : > { %v906_v0 = vmov 0.0   ;;  %vm907_vm0 = vmmov 0   ;;  %v745_v1 = vld [vmem:[#allocation5 + $0x40] sm:$0xff]   ;;  %v748_v4 = vld [vmem:[#allocation5 + $0x48] sm:$0xff]   ;;  %v751_v7 = vld [vmem:[#allocation5 + $0x50] sm:$0xff]   ;;  %s597_s18 = sshll.u32 %s1065_s26, 3 }
  0x56   : > { %881 = vsyncadd (%p1150_p1), [#allocation6], 4294964224  ;;  %661 = vmatprep.subr.bf16.mxu1 %v906_v0  ;;  %677 = vmatprep.mubr.msk.bf16.mxu1 %vm907_vm0, %v906_v0  ;;  %v746_v2 = vld [vmem:[#allocation5] sm:$0xff]   ;;  %v749_v5 = vld [vmem:[#allocation5 + $0x8] sm:$0xff]   ;;  %s627_s25 = sshll.u32 %s950_s16, 7  ;;  %s201_s4 = scalar_lea.vmem [#allocation7], %s597_s18 }
  0x57   : > { %630 = vmatprep.subr.bf16.mxu0 %v745_v1  ;;  %v747_v3 = vld [vmem:[#allocation5 + $0x80] sm:$0xff]   ;;  %v750_v6 = vld [vmem:[#allocation5 + $0x88] sm:$0xff]   ;;  %v752_v8 = vld [vmem:[#allocation5 + $0x10] sm:$0xff]   ;;  %s510_s5 = sshll.u32 %s201_s4, 4  ;;  %s1089_s10 = scalar_lea.hbm %s1136_s3, %s627_s25  ;;  %s1091_s5 = int_to_ptr.vmem [resolvable:$true] %s510_s5 }
  0x58   : > { %631 = vmatpush3.bf16.msra.mxu0 %v746_v2  ;;  %662 = vmatpush3.bf16.msra.mxu1 %v747_v3  ;;  %v753_v9 = vld [vmem:[#allocation5 + $0x90] sm:$0xff]   ;;  %v754_v10 = vld [vmem:[#allocation5 + $0x58] sm:$0xff]   ;;  %v757_v13 = vld [vmem:[#allocation5 + $0x60] sm:$0xff]   ;;  %s497_s11 = scalar_lea.sflag [#allocation4], %s1065_s26  ;;  %s830_s27 = scalar_lea.vmem %s1091_s5, 128 }
  0x59   : > { %632 = vmatprep.subr.bf16.mxu0 %v748_v4  ;;  %663 = vmatprep.subr.bf16.mxu1 %v906_v0  ;;  %v755_v11 = vld [vmem:[#allocation5 + $0x18] sm:$0xff]   ;;  %v758_v14 = vld [vmem:[#allocation5 + $0x20] sm:$0xff]   ;;  %v760_v16 = vld [vmem:[#allocation5 + $0x68] sm:$0xff]   ;;  %p831_p4 = scmp.ne.s32.totalorder %s1091_s5, %s830_s27  ;;  %s908_s16 = smov [#allocation7]  }
  0x5a   : > { %v756_v12 = vld [vmem:[#allocation5 + $0x98] sm:$0xff]   ;;  %v759_v15 = vld [vmem:[#allocation5 + $0xa0] sm:$0xff]   ;;  %v761_v17 = vld [vmem:[#allocation5 + $0x28] sm:$0xff]   ;;  %s834_s28 = sshll.u32 %s908_s16, 4  ;;  %s835_s28 = int_to_ptr.vmem [resolvable:$false] %s834_s28 }
  0x5b   : > { %v762_v18 = vld [vmem:[#allocation5 + $0xa8] sm:$0xff]   ;;  %v763_v19 = vld [vmem:[#allocation5 + $0x70] sm:$0xff]   ;;  %v766_v23 = vld [vmem:[#allocation5 + $0x78] sm:$0xff]   ;;  %p832_p6 = pnand %p831_p4, %p1020_p12  ;;  %s836_s29 = scalar_lea.vmem %s835_s28, 256 }
  0x5c   : > { %633 = vmatpush3.bf16.msra.mxu0 %v749_v5  ;;  %664 = vmatpush3.bf16.msra.mxu1 %v750_v6  ;;  %v764_v20 = vld [vmem:[#allocation5 + $0x30] sm:$0xff]   ;;  %v767_v25 = vld [vmem:[#allocation5 + $0x38] sm:$0xff]   ;;  %v598_v31 = vld [vmem:[%s1135_s2] ss:$0 sm:$0xff]  ;;  %p837_p10 = scmp.lt.s32.totalorder %s1091_s5, %s835_s28  ;;  %p838_p11 = scmp.lt.s32.totalorder %s836_s29, %s830_s27 }
  0x5d   : > { %634 = vmatprep.subr.bf16.mxu0 %v751_v7  ;;  %665 = vmatprep.subr.bf16.mxu1 %v906_v0  ;;  %v203_v21 = vld [vmem:[%s1069_s7] sm:$0xff]  ;;  %v771_v28 = vld [vmem:[%s1069_s7 + $0x8] ss:$0 sps:$4 sm:$0xff]   ;;  %p833_p8 = pneg %p832_p6 }
  0x5e   : > { %v765_v22 = vld [vmem:[#allocation5 + $0xb0] sm:$0xff]   ;;  %v600_v24 = vcombine.high %v203_v21, %v203_v21  ;;  %v770_v26 = vld [vmem:[#allocation5 + $0xb8] sm:$0xff]   ;;  %v599_v27 = vcombine.low %v203_v21, %v203_v21  ;;  %p839_p3 = por %p838_p11, %p837_p10 }
  0x60   : > { %635 = vmatpush3.bf16.msra.mxu0 %v752_v8  ;;  %666 = vmatpush3.bf16.msra.mxu1 %v753_v9  ;;  %p840_p7 = pnand %p839_p3, %p833_p8 }
  0x61   : > { %636 = vmatprep.subr.bf16.mxu0 %v754_v10  ;;  %667 = vmatprep.subr.bf16.mxu1 %v906_v0 }
  0x62   : > { %447 = vmatprep.mubr.bf16.mxu0 %v600_v24 }
  0x64   : > { %637 = vmatpush3.bf16.msra.mxu0 %v755_v11  ;;  %668 = vmatpush3.bf16.msra.mxu1 %v756_v12 }
  0x65   : > { %638 = vmatprep.subr.bf16.mxu0 %v757_v13  ;;  %669 = vmatprep.subr.bf16.mxu1 %v906_v0 }
  0x68   : > { %639 = vmatpush3.bf16.msra.mxu0 %v758_v14  ;;  %670 = vmatpush3.bf16.msra.mxu1 %v759_v15 }
  0x69   : > { %640 = vmatprep.subr.bf16.mxu0 %v760_v16  ;;  %671 = vmatprep.subr.bf16.mxu1 %v906_v0 }
  0x6c   : > { %641 = vmatpush3.bf16.msra.mxu0 %v761_v17  ;;  %672 = vmatpush3.bf16.msra.mxu1 %v762_v18 }
  0x6d   : > { %642 = vmatprep.subr.bf16.mxu0 %v763_v19  ;;  %673 = vmatprep.subr.bf16.mxu1 %v906_v0 }
  0x70   : > { %643 = vmatpush3.bf16.msra.mxu0 %v764_v20  ;;  %674 = vmatpush3.bf16.msra.mxu1 %v765_v22 }
  0x71   : > { %644 = vmatprep.subr.bf16.mxu0 %v766_v23  ;;  %675 = vmatprep.subr.bf16.mxu1 %v906_v0 }
  0x74   : > { %645 = vmatpush3.bf16.msra.mxu0 %v767_v25  ;;  %676 = vmatpush3.bf16.msra.mxu1 %v770_v26 }
  0x77   : > { %448 = vmatmul.mubr.bf16.vlgmr.msra.gmra.mrb[0].mxu0 %v599_v27  ;;  %678 = vmatmul.mubr.bf16.vlgmr.msra.gmra.mrb[0].mxu1 %v771_v28 }
 0x14a   : > { %v646_v29 = vpop.f32.mrb[0].mxu0  ;;  %v489_v32 = vpop.f32.mrb[0].mxu1 }
 0x14b   : > { %v647_v30 = vpop.f32.mrb[1].mxu0  ;;  %v679_v35 = vpop.f32.mrb[1].mxu1 }
 0x14c   : > { %v648_v33 = vadd.f32 %v647_v30, %v646_v29  ;;  %v649_v34 = vpop.f32.mrb[2].mxu0  ;;  %v492_v37 = vpop.f32.mrb[2].mxu1 }
 0x14d   : > { %v650_v36 = vpop.f32.mrb[3].mxu0  ;;  %v680_v39 = vpop.f32.mrb[3].mxu1 }
 0x14e   : > { %v450_v38 = vadd.f32 %v648_v33, %v598_v31 }
 0x150   : > { %v490_v40 = vadd.f32 %v489_v32, %v450_v38 }
 0x152   : > { %495 = vst [vmem:[%s201_s4] sm:$0xff] %v490_v40 }
 0x153   : > { %843 = shalt.err (!%p840_p7)
}
 0x154   : > { %s844_s22 = scalar_lea.hbm %s1089_s10, 128  ;;  %s848_s6 = scalar_lea.hbm %s1136_s3, 256 }
 0x155   : > { %p845_p9 = scmp.ne.s32.totalorder %s1089_s10, %s844_s22  ;;  %p849_p0 = scmp.lt.u32.totalorder %s1089_s10, %s1136_s3 }
 0x156   : > { %p850_p13 = scmp.lt.u32.totalorder %s848_s6, %s844_s22  ;;  %p852_p4 = scmp.lt.u32.totalorder %s844_s22, %s1089_s10 }
 0x157   : > { %p846_p2 = pnand %p845_p9, %p1020_p12 }
 0x158   : > { %p851_p1 = por %p850_p13, %p849_p0 }
 0x159   : > { %p847_p5 = pneg %p846_p2 }
 0x15a   : > { %p853_p6 = por %p852_p4, %p851_p1 }
 0x15c   : > { %p854_p8 = pnand %p853_p6, %p847_p5 }
 0x15e   : > { %857 = shalt.err (!%p854_p8)
}
 0x15f   : > { %690 = dma.vmem_to_hbm [thread:$0]  (%p1020_p12), %s1091_s5, 128, %s1089_s10, %s497_s11  }
 0x160 PF: > { %s522_s20 = sand.u32 1, %s888_s12   ;;  %p1151_p10 = scmp.ne.s32.totalorder %s1141_s19, 0 }
 0x161   : > { %p1152_p11 = scmp.ge.s32.totalorder %s900_s15, 2  ;;  %s523_s23 = scalar_lea.sflag [#allocation4], %s522_s20 }
 0x163   : > { %p701_p3 = pnand %p1152_p11, %p1151_p10 }
 0x165   : > { %883 = dma.done.wait (!%p701_p3), %s523_s23, 128  }
 0x166   : > { %885 = vsyncadd (!%p701_p3), %s523_s23, 4294967168  ;;  %p17_p7 = scmp.ge.s32.totalorder %s985_s24, 4   ;;  %s1153_s12 = smov %s892_s13 }
 0x167   : > { %s1154_s13 = smov %s896_s14  ;;  %s1155_s14 = smov %s1016_s17 }
 0x168   : > { %s1156_s15 = smov %s985_s24  ;;  %19 = sbr.rel (!%p17_p7) target bundleno = 6 (0x6), region = 81 }
 0x16f   :  { %528 = vsyncpa [#allocation3], 1 }
 0x170   :  { %530 = vsyncpa [#allocation3 + $0x1], 1 }
 0x171   :  { %531 = vsyncpa [#allocation6], 1 }
 0x172   :  { %532 = vsyncpa [#allocation4], 1 }
 0x173   :  { %534 = vsyncpa [#allocation4 + $0x1], 1 }

</bundles_post_ra>
